<compile_context>
chip_gen: v7x
topology: tpu7x:2x2x1
jax: 0.10.0
libtpu: 0.0.40
codegen_flags: <defaults>
</compile_context>

<pallas_src>
import functools

import jax
import jax.numpy as jnp
from jax.experimental import pallas as pl
from jax.experimental.pallas import tpu as pltpu

LANES = 128
MAX_BLOCK_ROWS = 1024   # up to 512 KiB (f32) per input block
NUM_SLICES = 2          # leading "parallel" grid axis (v7x megacore split)


def _iou_kernel(x_ref, y_ref, o_ref, acc_ref, *,
                valid_rows, blocks_per_slice, block_rows):
    p = pl.program_id(0)   # parallel slice
    i = pl.program_id(1)   # reduction step within the slice

    @pl.when(i == 0)
    def _():
        acc_ref[...] = jnp.zeros_like(acc_ref)

    # Global row index of the first row of the *intended* block. The DMA block
    # index is clamped in the index_map; the mask below zeroes rows that are
    # out of range or duplicated by that clamp (and any partial-block rows).
    row0 = (p * blocks_per_slice + i) * block_rows
    row_ids = row0 + jax.lax.broadcasted_iota(jnp.int32, x_ref.shape, 0)
    valid = row_ids < valid_rows

    x = jnp.where(valid, x_ref[...].astype(jnp.float32), 0.0)
    y = jnp.where(valid, y_ref[...].astype(jnp.float32), 0.0)

    # Lane-wise partial sums; keeps the loop-carried dependency on a (1,128)
    # vector instead of a scalar + masked (1,1) store every step.
    acc_ref[0:1, :] += jnp.sum(x * y, axis=0, keepdims=True)
    acc_ref[1:2, :] += jnp.sum(x + y, axis=0, keepdims=True)

    @pl.when(i == pl.num_programs(1) - 1)
    def _():
        o_ref[0] = acc_ref[...]


def iou_loss(inputs, targets, smooth=1.0):
    """Pallas implementation of IoULoss.forward. Returns a scalar float32."""
    x = jnp.reshape(inputs, (-1,))
    y = jnp.reshape(targets, (-1,))
    n = x.shape[0]

    rows = (n + LANES - 1) // LANES
    n_pad = rows * LANES
    if n_pad != n:
        # Only copies when the flat size is not a multiple of 128; zero pad
        # leaves both sums unchanged.
        x = jnp.pad(x, (0, n_pad - n))
        y = jnp.pad(y, (0, n_pad - n))
    x2 = x.reshape(rows, LANES)
    y2 = y.reshape(rows, LANES)

    block_rows = min(MAX_BLOCK_ROWS, rows)
    total_blocks = (rows + block_rows - 1) // block_rows
    blocks_per_slice = (total_blocks + NUM_SLICES - 1) // NUM_SLICES
    max_block = total_blocks - 1

    def in_map(p, i):
        blk = p * blocks_per_slice + i
        return (jnp.minimum(blk, max_block), 0)

    kernel = functools.partial(
        _iou_kernel,
        valid_rows=rows,
        blocks_per_slice=blocks_per_slice,
        block_rows=block_rows,
    )

    partials = pl.pallas_call(
        kernel,
        out_shape=jax.ShapeDtypeStruct((NUM_SLICES, 2, LANES), jnp.float32),
        grid=(NUM_SLICES, blocks_per_slice),
        in_specs=[
            pl.BlockSpec((block_rows, LANES), in_map),
            pl.BlockSpec((block_rows, LANES), in_map),
        ],
        out_specs=pl.BlockSpec((1, 2, LANES), lambda p, i: (p, 0, 0)),
        scratch_shapes=[pltpu.VMEM((2, LANES), jnp.float32)],
        compiler_params=pltpu.CompilerParams(
            dimension_semantics=("parallel", "arbitrary"),
        ),
    )(x2, y2)

    # Tiny epilogue on a (2, 2, 128) array: combine per-slice partials.
    intersection = jnp.sum(partials[:, 0, :])
    total = jnp.sum(partials[:, 1, :])
    union = total - intersection
    return 1.0 - (intersection + smooth) / (union + smooth)


if __name__ == "__main__":
    key = jax.random.PRNGKey(0)
    k1, k2 = jax.random.split(key)
    # Small shapes consistent with a segmentation-style use: NCHW (2,4,16,16)
    inputs = jax.nn.sigmoid(jax.random.normal(k1, (2, 4, 16, 16), jnp.float32))
    targets = (jax.random.uniform(k2, (2, 4, 16, 16)) > 0.5).astype(jnp.float32)

    loss = iou_loss(inputs, targets, smooth=1.0)
    loss = jax.block_until_ready(loss)

    # Reference check in plain JAX (same math as the PyTorch forward).
    xf = inputs.reshape(-1)
    yf = targets.reshape(-1)
    inter = jnp.sum(xf * yf)
    union = jnp.sum(xf + yf) - inter
    ref = 1.0 - (inter + 1.0) / (union + 1.0)
    assert jnp.allclose(loss, ref, rtol=1e-5, atol=1e-5), (loss, ref)

    print("KERNEL_OK")
</pallas_src>

<mosaic_0001>
module attributes {stable_mosaic.version = 11 : i64} {
  func.func @_iou_kernel(%arg0: i32, %arg1: i32, %arg2: memref<16x128xf32, #tpu.memory_space<vmem>>, %arg3: memref<16x128xf32, #tpu.memory_space<vmem>>, %arg4: memref<1x2x128xf32, #tpu.memory_space<vmem>>, %arg5: memref<2x128xf32, #tpu.memory_space<vmem>>) attributes {dimension_semantics = [#tpu.dimension_semantics<parallel>, #tpu.dimension_semantics<arbitrary>], iteration_bounds = array<i64: 2, 1>, scalar_prefetch = 0 : i64, scratch_operands = 1 : i64, tpu.core_type = #tpu.core_type<tc>, window_params = [{transform_indices = @transform_0, window_bounds = array<i64: 16, 128>}, {transform_indices = @transform_1, window_bounds = array<i64: 16, 128>}, {transform_indices = @transform_2, window_bounds = array<i64: 1, 2, 128>}]} {
    %c0_i32 = arith.constant 0 : i32
    %0 = arith.cmpi eq, %arg1, %c0_i32 : i32
    %1 = arith.extui %0 : i1 to i32
    %c0_i32_0 = arith.constant 0 : i32
    %2 = arith.cmpi ne, %1, %c0_i32_0 : i32
    scf.if %2 {
      %cst_17 = arith.constant 0.000000e+00 : f32
      %32 = vector.broadcast %cst_17 : f32 to vector<2x128xf32>
      %c0_18 = arith.constant 0 : index
      %c0_19 = arith.constant 0 : index
      %33 = vector.load %arg5[%c0_18, %c0_19] : memref<2x128xf32, #tpu.memory_space<vmem>>, vector<2x128xf32>
      tpu.vector_store %arg5[%c0_18, %c0_19], %32 {strides = array<i32>} : memref<2x128xf32, #tpu.memory_space<vmem>>, vector<2x128xf32>,
    } else {
    }
    %c1_i32 = arith.constant 1 : i32
    %3 = arith.muli %arg0, %c1_i32 : i32
    %4 = arith.addi %3, %arg1 : i32
    %c16_i32 = arith.constant 16 : i32
    %5 = arith.muli %4, %c16_i32 : i32
    %6 = tpu.iota {dimensions = array<i32: 0>} : vector<16x128xi32>
    %7 = vector.broadcast %5 : i32 to vector<16x128xi32>
    %8 = arith.addi %7, %6 : vector<16x128xi32>
    %c16_i32_1 = arith.constant 16 : i32
    %9 = vector.broadcast %c16_i32_1 : i32 to vector<16x128xi32>
    %10 = arith.cmpi slt, %8, %9 : vector<16x128xi32>
    %c0 = arith.constant 0 : index
    %c0_2 = arith.constant 0 : index
    %11 = vector.load %arg2[%c0, %c0_2] : memref<16x128xf32, #tpu.memory_space<vmem>>, vector<16x128xf32>
    %cst = arith.constant 0.000000e+00 : f32
    %12 = vector.broadcast %cst : f32 to vector<16x128xf32>
    %13 = arith.select %10, %11, %12 : vector<16x128xi1>, vector<16x128xf32>
    %c0_3 = arith.constant 0 : index
    %c0_4 = arith.constant 0 : index
    %14 = vector.load %arg3[%c0_3, %c0_4] : memref<16x128xf32, #tpu.memory_space<vmem>>, vector<16x128xf32>
    %cst_5 = arith.constant 0.000000e+00 : f32
    %15 = vector.broadcast %cst_5 : f32 to vector<16x128xf32>
    %16 = arith.select %10, %14, %15 : vector<16x128xi1>, vector<16x128xf32>
    %c0_6 = arith.constant 0 : index
    %c0_7 = arith.constant 0 : index
    %17 = vector.load %arg5[%c0_6, %c0_7] : memref<2x128xf32, #tpu.memory_space<vmem>>, vector<1x128xf32>
    %18 = arith.mulf %13, %16 : vector<16x128xf32>
    %cst_8 = arith.constant dense<0.000000e+00> : vector<128xf32>
    %19 = vector.multi_reduction <add>, %18, %cst_8 [0] : vector<16x128xf32> to vector<128xf32>
    %20 = vector.shape_cast %19 : vector<128xf32> to vector<1x128xf32>
    %21 = arith.addf %17, %20 : vector<1x128xf32>
    %c0_9 = arith.constant 0 : index
    %c0_10 = arith.constant 0 : index
    %22 = vector.load %arg5[%c0_9, %c0_10] : memref<2x128xf32, #tpu.memory_space<vmem>>, vector<1x128xf32>
    tpu.vector_store %arg5[%c0_9, %c0_10], %21 {strides = array<i32>} : memref<2x128xf32, #tpu.memory_space<vmem>>, vector<1x128xf32>,
    %c1 = arith.constant 1 : index
    %c0_11 = arith.constant 0 : index
    %23 = vector.load %arg5[%c1, %c0_11] : memref<2x128xf32, #tpu.memory_space<vmem>>, vector<1x128xf32>
    %24 = arith.addf %13, %16 : vector<16x128xf32>
    %cst_12 = arith.constant dense<0.000000e+00> : vector<128xf32>
    %25 = vector.multi_reduction <add>, %24, %cst_12 [0] : vector<16x128xf32> to vector<128xf32>
    %26 = vector.shape_cast %25 : vector<128xf32> to vector<1x128xf32>
    %27 = arith.addf %23, %26 : vector<1x128xf32>
    %c1_13 = arith.constant 1 : index
    %c0_14 = arith.constant 0 : index
    %28 = vector.load %arg5[%c1_13, %c0_14] : memref<2x128xf32, #tpu.memory_space<vmem>>, vector<1x128xf32>
    tpu.vector_store %arg5[%c1_13, %c0_14], %27 {strides = array<i32>} : memref<2x128xf32, #tpu.memory_space<vmem>>, vector<1x128xf32>,
    %c0_i32_15 = arith.constant 0 : i32
    %29 = arith.cmpi eq, %arg1, %c0_i32_15 : i32
    %30 = arith.extui %29 : i1 to i32
    %c0_i32_16 = arith.constant 0 : i32
    %31 = arith.cmpi ne, %30, %c0_i32_16 : i32
    scf.if %31 {
      %c0_17 = arith.constant 0 : index
      %c0_18 = arith.constant 0 : index
      %32 = vector.load %arg5[%c0_17, %c0_18] : memref<2x128xf32, #tpu.memory_space<vmem>>, vector<2x128xf32>
      %c0_19 = arith.constant 0 : index
      %c0_20 = arith.constant 0 : index
      %c0_21 = arith.constant 0 : index
      %33 = vector.load %arg4[%c0_19, %c0_20, %c0_21] : memref<1x2x128xf32, #tpu.memory_space<vmem>>, vector<1x2x128xf32>
      %34 = vector.shape_cast %33 : vector<1x2x128xf32> to vector<2x128xf32>
      %35 = vector.shape_cast %32 : vector<2x128xf32> to vector<1x2x128xf32>
      tpu.vector_store %arg4[%c0_19, %c0_20, %c0_21], %35 {strides = array<i32>} : memref<1x2x128xf32, #tpu.memory_space<vmem>>, vector<1x2x128xf32>,
    } else {
    }
    return
  }
  func.func @transform_0(%arg0: i32, %arg1: i32) -> (i32, i32) {
    %c1_i32 = arith.constant 1 : i32
    %0 = arith.muli %arg0, %c1_i32 : i32
    %1 = arith.addi %0, %arg1 : i32
    %c0_i32 = arith.constant 0 : i32
    %2 = arith.minsi %1, %c0_i32 : i32
    %c0_i32_0 = arith.constant 0 : i32
    %c0_i32_1 = arith.constant 0 : i32
    return %2, %c0_i32_0 : i32, i32
  }
  func.func @transform_1(%arg0: i32, %arg1: i32) -> (i32, i32) {
    %c1_i32 = arith.constant 1 : i32
    %0 = arith.muli %arg0, %c1_i32 : i32
    %1 = arith.addi %0, %arg1 : i32
    %c0_i32 = arith.constant 0 : i32
    %2 = arith.minsi %1, %c0_i32 : i32
    %c0_i32_0 = arith.constant 0 : i32
    %c0_i32_1 = arith.constant 0 : i32
    return %2, %c0_i32_0 : i32, i32
  }
  func.func @transform_2(%arg0: i32, %arg1: i32) -> (i32, i32, i32) {
    %c0_i32 = arith.constant 0 : i32
    %c0_i32_0 = arith.constant 0 : i32
    %c0_i32_1 = arith.constant 0 : i32
    return %arg0, %c0_i32, %c0_i32_0 : i32, i32, i32
  }
}

</mosaic_0001>

<bundles_post_ra>
// kernel: tpu_custom_call.1
= control target key start
LH: loop header
LB: loop body
LE: loop exit
PB: predicated region body
PF: predicated region fallthrough
CT: control target
= control target key end

     0   :  { %7 = vsyncpa [#allocation4], 0  ;;  %s916_s0 = inlined_call_operand.hbm [shape: f32[16,128], index: 0, kind: input, shape index: {}]   ;;  %s917_s1 = inlined_call_operand.hbm [shape: f32[16,128], index: 1, kind: input, shape index: {}]   ;;  %s918_s2 = inlined_call_operand.hbm [shape: f32[2,2,128], index: 2, kind: output, shape index: {}]  }
   0x1   :  { %9 = vsyncpa [#allocation4 + $0x1], 0 }
   0x2   :  { %10 = vsyncpa [#allocation7], 0 }
   0x3   :  { %12 = vsyncpa [#allocation7 + $0x1], 0 }
   0x4   :  { %13 = vsyncpa [#allocation5], 0 }
   0x5   :  { %15 = vsyncpa [#allocation5 + $0x1], 0  ;;  %s712_s9 = smov 0   ;;  %s714_s10 = smov 0  }
   0x6   :  { %s716_s11 = smov 0   ;;  %s718_s12 = smov 0  }
   0x7   :  { %s720_s13 = smov 0   ;;  %s722_s14 = smov 0  }
   0x8   :  { %s724_s15 = smov 0   ;;  %s726_s16 = smov 0  }
   0x9 LB: > { %s407_s17 = sadd.s32 4294967295, %s689_s16   ;;  %s408_s18 = sadd.s32 4294967294, %s689_s16   ;;  %s689_s16 = sphi %s726_s16, %s21_s16   ;;  %s685_s15 = sphi %s724_s15, %s937_s15   ;;  %s681_s14 = sphi %s722_s14, %s936_s14   ;;  %s677_s13 = sphi %s720_s13, %s906_s13   ;;  %s673_s12 = sphi %s718_s12, %s935_s12   ;;  %s669_s11 = sphi %s716_s11, %s934_s11   ;;  %s665_s10 = sphi %s714_s10, %s933_s10   ;;  %s661_s9 = sphi %s712_s9, %s932_s9  }
   0xa   : > { %s33_s19 = sadd.s32 1, %s685_s15  ;;  %p658_p1 = scmp.ne.s32.totalorder %s677_s13, 0 }
   0xb   : > { %p35_p0 = scmp.ge.s32.totalorder %s33_s19, 2  ;;  %p54_p2 = scmp.eq.s32.totalorder %s689_s16, 0 }
   0xc   : > { %p59_p3 = scmp.ne.s32.totalorder %s677_s13, %s673_s12  ;;  %p60_p5 = scmp.eq.s32.totalorder %s407_s17, 0 }
   0xd   : > { %s939_s19 = smov (%p35_p0, %s33_s19), 0  ;;  %p758_p4 = por %p658_p1, %p54_p2 }
   0xe   : > { %p762_p6 = por %p60_p5, %p59_p3  ;;  %s101_s22 = ssub.s32 %s685_s15, %s939_s19 }
   0xf   : > { %p102_p7 = scmp.eq.s32.totalorder %s101_s22, 0  ;;  %s104_s23 = sadd.s32 1, %s669_s11 }
  0x10   : > { %s922_s21 = scalar_select %p762_p6, 1, 0 }
  0x11   : > { %s770_s24 = scalar_select %p102_p7, %s669_s11, %s104_s23  }
  0x12   : > { %p114_p8 = scmp.ne.s32.totalorder %s669_s11, %s665_s10  ;;  %p115_p9 = scmp.eq.s32.totalorder %s407_s17, 1 }
  0x13   : > { %p120_p10 = scmp.ne.s32.totalorder %s665_s10, %s661_s9  ;;  %p121_p11 = scmp.eq.s32.totalorder %s408_s18, 1 }
  0x14   : > { %p776_p12 = por %p115_p9, %p114_p8  ;;  %p445_p1 = scmp.lt.s32.totalorder %s689_s16, 2 }
  0x15   : > { %p781_p0 = por %p121_p11, %p120_p10  ;;  %s691_s27 = smov [#allocation3]  }
  0x16   : > { %s923_s25 = scalar_select %p776_p12, 1, 0 }
  0x17   : > { %s924_s26 = scalar_select %p781_p0, 1, 0 }
  0x18   : > { %s155_s28 = sshll.u32 %s691_s27, 4  ;;  %p788_p2 = pnand %p445_p1, %p758_p4  ;;  %s156_s28 = int_to_ptr.vmem [resolvable:$true] %s155_s28 }
  0x19   : > { %s522_s4 = scalar_lea.hbm %s916_s0, 256 }
  0x1a   : > { %p523_p3 = scmp.ne.s32.totalorder %s916_s0, %s522_s4  ;;  %p524_p5 = pneg %p788_p2 }
  0x1b   : > { %p529_p8 = scmp.lt.u32.totalorder %s522_s4, %s522_s4  ;;  %p531_p9 = scmp.lt.u32.totalorder %s522_s4, %s916_s0 }
  0x1c   : > { %p525_p7 = pnand %p524_p5, %p523_p3 }
  0x1d   : > { %p532_p10 = por %p531_p9, %p529_p8 }
  0x1e   : > { %p526_p4 = pneg %p525_p7 }
  0x20   : > { %p533_p11 = pnand %p532_p10, %p526_p4 }
  0x22   : > { %536 = shalt.err (!%p533_p11)
}
  0x23   : > { %s537_s12 = scalar_lea.vmem %s156_s28, 256  ;;  %s544_s17 = scalar_lea.vmem %s156_s28, 512 }
  0x24   : > { %p538_p1 = scmp.ne.s32.totalorder %s156_s28, %s537_s12  ;;  %p545_p12 = scmp.lt.s32.totalorder %s156_s28, %s156_s28 }
  0x25   : > { %p546_p6 = scmp.lt.s32.totalorder %s544_s17, %s537_s12 }
  0x26   : > { %p540_p13 = pnand %p538_p1, %p524_p5 }
  0x27   : > { %p547_p3 = por %p546_p6, %p545_p12 }
  0x28   : > { %p541_p0 = pneg %p540_p13 }
  0x2a   : > { %p548_p7 = pnand %p547_p3, %p541_p0 }
  0x2c   : > { %551 = shalt.err (!%p548_p7)
}
  0x2d   : > { %s692_s18 = smov 128   ;;  %s693_s20 = smov 8  }
  0x2e   : > { %437 = dma.hbm_to_vmem [thread:$0]  (!%p788_p2), %s916_s0, 256, %s156_s28, [#allocation4], %s692_s18, %s692_s18, %s693_s20  }
  0x2f   : > { %p417_p13 = scmp.ge.s32.totalorder %s689_s16, 1  ;;  %p187_p4 = scmp.lt.s32.totalorder %s689_s16, 3 }
  0x30   : > { %s694_s30 = smov [#allocation6]   ;;  %s552_s6 = scalar_lea.hbm %s917_s1, 256 }
  0x31   : > { %p819_p8 = pnand %p417_p13, %p187_p4  ;;  %s179_s3 = sshll.u32 %s694_s30, 4  ;;  %s180_s3 = int_to_ptr.vmem [resolvable:$true] %s179_s3 }
  0x32   : > { %p553_p6 = scmp.ne.s32.totalorder %s917_s1, %s552_s6  ;;  %p559_p9 = scmp.lt.u32.totalorder %s552_s6, %s552_s6 }
  0x33   : > { %s926_s27 = scalar_select %p819_p8, 1, 0 }
  0x34   : > { %p555_p12 = pnand %p553_p6, %p524_p5  ;;  %p561_p10 = scmp.lt.u32.totalorder %s552_s6, %s917_s1 }
  0x36   : > { %p556_p0 = pneg %p555_p12  ;;  %p562_p11 = por %p561_p10, %p559_p9 }
  0x38   : > { %p563_p1 = pnand %p562_p11, %p556_p0 }
  0x3a   : > { %566 = shalt.err (!%p563_p1)
}
  0x3b   : > { %s567_s17 = scalar_lea.vmem %s180_s3, 256  ;;  %s574_s22 = scalar_lea.vmem %s180_s3, 512 }
  0x3c   : > { %p568_p3 = scmp.ne.s32.totalorder %s180_s3, %s567_s17  ;;  %p575_p4 = scmp.lt.s32.totalorder %s180_s3, %s180_s3 }
  0x3d   : > { %p576_p8 = scmp.lt.s32.totalorder %s574_s22, %s567_s17 }
  0x3e   : > { %p570_p7 = pnand %p568_p3, %p524_p5 }
  0x3f   : > { %p577_p6 = por %p576_p8, %p575_p4 }
  0x40   : > { %p571_p13 = pneg %p570_p7 }
  0x42   : > { %p578_p12 = pnand %p577_p6, %p571_p13 }
  0x44   : > { %581 = shalt.err (!%p578_p12)
}
  0x45   : > { %440 = dma.hbm_to_vmem [thread:$0]  (!%p788_p2), %s917_s1, 256, %s180_s3, [#allocation7], %s692_s18, %s692_s18, %s693_s20  }
  0x46   : > { %p927_p0 = scmp.ne.s32.totalorder %s926_s27, 0 }
  0x47   : > { %s193_s4 = sand.u32 (!%p927_p0), 1, %s677_s13   ;;  %p928_p5 = scmp.ne.s32.totalorder (!%p927_p0), %s922_s21, 0 }
  0x48   : > { %191 = sbr.rel (%p927_p0) target bundleno = 132 (0x84), region = 28  ;;  %s418_s5 = sshll.u32 (!%p927_p0), %s193_s4, 4 }
  0x49   : > { %s194_s6 = scalar_lea.sflag (!%p927_p0), [#allocation4], %s193_s4  ;;  %s197_s7 = scalar_lea.vmem (!%p927_p0), [#allocation3], %s418_s5 }
  0x4f   : > { %647 = dma.done.wait (%p928_p5), %s194_s6, 256  }
  0x50   : > { %649 = vsyncadd (%p928_p5), %s194_s6, 4294967040  ;;  %s203_s29 = scalar_lea.sflag [#allocation7], %s193_s4  ;;  %s206_s8 = scalar_lea.vmem [#allocation6], %s418_s5 }
  0x51   : > { %651 = dma.done.wait (%p928_p5), %s203_s29, 256  }
  0x52   : > { %653 = vsyncadd (%p928_p5), %s203_s29, 4294967040  ;;  %s421_s18 = sshll.u32 %s681_s14, 4  ;;  %v247_v0 = vlaneseq  ;;  %v695_v1 = vmov 0.0   ;;  %v255_v7 = vld [vmem:[%s197_s7] sm:$0xff]  ;;  %v256_v8 = vld [vmem:[%s197_s7 + $0x8] sm:$0xff]  ;;  %s229_s21 = sand.u32 1, %s665_s10  }
  0x53   : > { %244 = vst [vmem:[#allocation2] sm:$0x3] %v695_v1  ;;  %v250_v2 = vstv %s421_s18  ;;  %v259_v9 = vld [vmem:[%s206_s8] sm:$0xff]  ;;  %v260_v11 = vld [vmem:[%s206_s8 + $0x8] sm:$0xff]  ;;  %s420_s20 = sshll.u32 %s229_s21, 1  ;;  %s423_s28 = sshll.u32 %s681_s14, 5 }
  0x54   : > { %v248_v3 = vshrl.u32 %v247_v0, 7  ;;  %s231_s27 = scalar_lea.vmem [#allocation8], %s420_s20  ;;  %s865_s22 = scalar_lea.hbm %s918_s2, %s423_s28 }
  0x55   : > { %s306_s3 = sshll.u32 %s231_s27, 4  ;;  %s293_s23 = scalar_lea.sflag [#allocation5], %s229_s21  ;;  %s860_s3 = int_to_ptr.vmem [resolvable:$true] %s306_s3 }
  0x56   : > { %v249_v4 = vadd.s32 8, %v248_v3  ;;  %v251_v5 = vadd.s32 %v250_v2, %v248_v3  ;;  %s582_s30 = scalar_lea.vmem %s860_s3, 32  ;;  %p929_p8 = scmp.ne.s32.totalorder %s923_s25, 0 }
  0x57   : > { %p583_p2 = scmp.ne.s32.totalorder %s860_s3, %s582_s30  ;;  %s696_s4 = smov [#allocation8]  }
  0x58   : > { %v252_v6 = vadd.s32 %v250_v2, %v249_v4  ;;  %vm253_vm0 = vcmp.lt.s32.totalorder %v251_v5, 16  ;;  %s586_s14 = sshll.u32 %s696_s4, 4  ;;  %s587_s14 = int_to_ptr.vmem [resolvable:$false] %s586_s14 }
  0x59   : > { %v257_v10 = vsel %vm253_vm0, %v255_v7, 0.0  ;;  %v261_v12 = vsel %vm253_vm0, %v259_v9, 0.0  ;;  %p584_p9 = pnand %p583_p2, %p929_p8  ;;  %s588_s5 = scalar_lea.vmem %s587_s14, 64 }
  0x5a   : > { %vm254_vm1 = vcmp.lt.s32.totalorder %v252_v6, 16  ;;  %v264_v15 = vmul.f32 %v261_v12, %v257_v10  ;;  %v276_v16 = vadd.f32 %v261_v12, %v257_v10  ;;  %v263_v31 = vld [vmem:[#allocation2] sm:$0x1]  ;;  %v275_v32 = vld [vmem:[#allocation2 + $0x1] sm:$0x1]  ;;  %p589_p11 = scmp.lt.s32.totalorder %s860_s3, %s587_s14  ;;  %p590_p1 = scmp.lt.s32.totalorder %s588_s5, %s582_s30 }
  0x5b   : > { %v258_v13 = vsel %vm254_vm1, %v256_v8, 0.0  ;;  %v262_v14 = vsel %vm254_vm1, %v260_v11, 0.0  ;;  %p585_p10 = pneg %p584_p9 }
  0x5c   : > { %v265_v17 = vmul.f32 %v262_v14, %v258_v13  ;;  %v277_v18 = vadd.f32 %v262_v14, %v258_v13  ;;  %p591_p3 = por %p590_p1, %p589_p11 }
  0x5e   : > { %v266_v19 = vadd.f32 %v265_v17, %v264_v15  ;;  %v278_v20 = vadd.f32 %v277_v18, %v276_v16  ;;  %p592_p7 = pnand %p591_p3, %p585_p10 }
  0x60   : > { %v267_v21 = vrot.slane %v266_v19, 4  ;;  %v279_v22 = vrot.slane %v278_v20, 4 }
  0x62   : > { %v268_v23 = vadd.f32 %v267_v21, %v266_v19  ;;  %v280_v24 = vadd.f32 %v279_v22, %v278_v20 }
  0x64   : > { %v269_v25 = vrot.slane %v268_v23, 2  ;;  %v281_v26 = vrot.slane %v280_v24, 2 }
  0x66   : > { %v270_v27 = vadd.f32 %v269_v25, %v268_v23  ;;  %v282_v28 = vadd.f32 %v281_v26, %v280_v24 }
  0x68   : > { %v271_v29 = vrot.slane %v270_v27, 1  ;;  %v283_v30 = vrot.slane %v282_v28, 1 }
  0x6a   : > { %v272_v33 = vadd.f32 %v271_v29, %v270_v27  ;;  %v284_v34 = vadd.f32 %v283_v30, %v282_v28 }
  0x6c   : > { %v273_v35 = vadd.f32 %v272_v33, %v263_v31  ;;  %v285_v36 = vadd.f32 %v284_v34, %v275_v32 }
  0x6e   : > { %274 = vst [vmem:[#allocation2] sm:$0x1] %v273_v35  ;;  %286 = vst [vmem:[#allocation2 + $0x1] sm:$0x1] %v285_v36 }
  0x75   : > { %v290_v37 = vld [vmem:[#allocation2] sm:$0x3] }
  0x76   : > { %291 = vst [vmem:[%s231_s27] sm:$0x3] %v290_v37 }
  0x77   : > { %595 = shalt.err (!%p592_p7)
}
  0x78   : > { %s596_s6 = scalar_lea.hbm %s865_s22, 32  ;;  %s600_s8 = scalar_lea.hbm %s918_s2, 64 }
  0x79   : > { %p597_p13 = scmp.ne.s32.totalorder %s865_s22, %s596_s6  ;;  %p601_p12 = scmp.lt.u32.totalorder %s865_s22, %s918_s2 }
  0x7a   : > { %p602_p0 = scmp.lt.u32.totalorder %s600_s8, %s596_s6  ;;  %p604_p2 = scmp.lt.u32.totalorder %s596_s6, %s865_s22 }
  0x7b   : > { %p598_p4 = pnand %p597_p13, %p929_p8 }
  0x7c   : > { %p603_p5 = por %p602_p0, %p601_p12 }
  0x7d   : > { %p599_p6 = pneg %p598_p4 }
  0x7e   : > { %p605_p9 = por %p604_p2, %p603_p5 }
  0x80   : > { %p606_p10 = pnand %p605_p9, %p599_p6 }
  0x82   : > { %609 = shalt.err (!%p606_p10)
}
  0x83   : > { %432 = dma.vmem_to_hbm [thread:$0]  (%p929_p8), %s860_s3, 32, %s865_s22, %s293_s23  }
  0x84 PF: > { %s318_s20 = sand.u32 1, %s661_s9   ;;  %p930_p11 = scmp.ne.s32.totalorder %s924_s26, 0 }
  0x85   : > { %p931_p1 = scmp.ge.s32.totalorder %s689_s16, 2  ;;  %s319_s27 = scalar_lea.sflag [#allocation5], %s318_s20 }
  0x87   : > { %p442_p3 = pnand %p931_p1, %p930_p11 }
  0x89   : > { %655 = dma.done.wait (!%p442_p3), %s319_s27, 32  }
  0x8a   : > { %657 = vsyncadd (!%p442_p3), %s319_s27, 4294967264  ;;  %s21_s16 = sadd.s32 1, %s689_s16   ;;  %s932_s9 = smov %s665_s10 }
  0x8b   : > { %p18_p7 = scmp.ge.s32.totalorder %s21_s16, 4   ;;  %s933_s10 = smov %s669_s11 }
  0x8c   : > { %s934_s11 = smov %s770_s24  ;;  %s935_s12 = smov %s677_s13 }
  0x8d   : > { %s906_s13 = smov 0   ;;  %s936_s14 = smov %s685_s15 }
  0x8e   : > { %s937_s15 = smov %s939_s19  ;;  %20 = sbr.rel (!%p18_p7) target bundleno = 9 (0x9), region = 94 }
  0x95   :  { %324 = vsyncpa [#allocation4], 1 }
  0x96   :  { %326 = vsyncpa [#allocation4 + $0x1], 1 }
  0x97   :  { %327 = vsyncpa [#allocation7], 1 }
  0x98   :  { %329 = vsyncpa [#allocation7 + $0x1], 1 }
  0x99   :  { %330 = vsyncpa [#allocation5], 1 }
  0x9a   :  { %332 = vsyncpa [#allocation5 + $0x1], 1 }

</bundles_post_ra>
